<compile_context>
chip_gen: v5e
topology: v5e:2x2
jax: 0.10.0
libtpu: 0.0.40
codegen_flags: <defaults>
</compile_context>

<pallas_src>
import functools

import jax
import jax.numpy as jnp
from jax.experimental import pallas as pl
from jax.experimental.pallas import tpu as pltpu

_MiB = 1024 * 1024


@functools.lru_cache(maxsize=None)
def _physical_vmem_bytes():
    try:
        return int(pltpu.get_tpu_info().vmem_capacity_bytes)
    except Exception:
        return 64 * _MiB


def _vmem_limit_bytes(estimate):
    # Leave ~25% of physical VMEM for compiler-internal scratch; on v7x (64 MiB
    # per TensorCore) this caps the request at 48 MiB instead of the whole chip.
    cap = (_physical_vmem_bytes() * 3) // 4
    return int(min(max(2 * estimate, 32 * _MiB), cap))


def _pick_tile(dim, target, align):
    """Largest tile <= target that divides dim and is `align`-aligned.

    When dim <= target the full extent is returned (a full-extent block is
    always a legal Pallas block even if unaligned). Otherwise only aligned
    divisors are accepted so the (8, 128) constraint is never violated; if none
    exists we fall back to the full extent.
    """
    if dim <= target:
        return dim
    for t in range(target, align - 1, -1):
        if dim % t == 0 and t % align == 0:
            return t
    # TODO(synk): for awkward extents, switch to cdiv grids with padded/masked
    # edge tiles instead of a single full-extent block.
    return dim


def _pad_rows(x2d, multiple=128):
    """Zero-pad the row (M) dim so the matmul M-tile search stays >= 128."""
    rows = x2d.shape[0]
    pad = (-rows) % multiple
    if pad:
        x2d = jnp.pad(x2d, ((0, pad), (0, 0)))
    return x2d, rows


# ----------------------------------------------------------------------------
# Kernel 1: fused qkv projection  (x @ Wq, x @ Wk, x @ Wv), tiled over (M, N, K)
# ----------------------------------------------------------------------------
def _qkv_proj_kernel(x_ref, wq_ref, wk_ref, wv_ref, q_ref, k_ref, v_ref,
                     accq, acck, accv):
    @pl.when(pl.program_id(2) == 0)
    def _():
        accq[...] = jnp.zeros(accq.shape, accq.dtype)
        acck[...] = jnp.zeros(acck.shape, acck.dtype)
        accv[...] = jnp.zeros(accv.shape, accv.dtype)

    x = x_ref[...]                                # bf16 already (cast in wrapper)
    accq[...] += jnp.dot(x, wq_ref[...], preferred_element_type=jnp.float32)
    acck[...] += jnp.dot(x, wk_ref[...], preferred_element_type=jnp.float32)
    accv[...] += jnp.dot(x, wv_ref[...], preferred_element_type=jnp.float32)

    @pl.when(pl.program_id(2) == pl.num_programs(2) - 1)
    def _():
        q_ref[...] = accq[...].astype(q_ref.dtype)
        k_ref[...] = acck[...].astype(k_ref.dtype)
        v_ref[...] = accv[...].astype(v_ref.dtype)


def pallas_qkv_proj(x2d, wq, wk, wv, out_dtype):
    """x2d: (BN, Cin); wq/wk/wv: (Cin, Cout) bf16 -> q, k, v each (BN, Cout)."""
    x2d, rows = _pad_rows(x2d.astype(wq.dtype))
    BN, Cin = x2d.shape
    Cout = wq.shape[1]
    tm = _pick_tile(BN, 1024, 128)
    tn = _pick_tile(Cout, 256, 128)
    tk = _pick_tile(Cin, 512, 128)
    obpe = jnp.dtype(out_dtype).itemsize
    est = (2 * tm * tk * 2 + 2 * 3 * tk * tn * 2
           + 2 * 3 * tm * tn * obpe + 3 * tm * tn * 4)
    out = jax.ShapeDtypeStruct((BN, Cout), out_dtype)
    q, k, v = pl.pallas_call(
        _qkv_proj_kernel,
        out_shape=(out, out, out),
        grid_spec=pltpu.PrefetchScalarGridSpec(
            num_scalar_prefetch=0,
            grid=(BN // tm, Cout // tn, Cin // tk),
            in_specs=[
                pl.BlockSpec((tm, tk), lambda i, j, k: (i, k)),
                pl.BlockSpec((tk, tn), lambda i, j, k: (k, j)),
                pl.BlockSpec((tk, tn), lambda i, j, k: (k, j)),
                pl.BlockSpec((tk, tn), lambda i, j, k: (k, j)),
            ],
            out_specs=[pl.BlockSpec((tm, tn), lambda i, j, k: (i, j))] * 3,
            scratch_shapes=[pltpu.VMEM((tm, tn), jnp.float32)] * 3,
        ),
        compiler_params=pltpu.CompilerParams(
            dimension_semantics=("parallel", "parallel", "arbitrary"),
            vmem_limit_bytes=_vmem_limit_bytes(est),
        ),
    )(x2d, wq, wk, wv)
    return q[:rows], k[:rows], v[:rows]


# ----------------------------------------------------------------------------
# Kernel 2: output projection  y = x @ W + b, tiled over (M, N, K)
# ----------------------------------------------------------------------------
def _proj_kernel(x_ref, w_ref, b_ref, o_ref, acc_ref):
    @pl.when(pl.program_id(2) == 0)
    def _():
        acc_ref[...] = jnp.zeros(acc_ref.shape, acc_ref.dtype)

    acc_ref[...] += jnp.dot(x_ref[...], w_ref[...],
                            preferred_element_type=jnp.float32)

    @pl.when(pl.program_id(2) == pl.num_programs(2) - 1)
    def _():
        o_ref[...] = (acc_ref[...] + b_ref[...].astype(jnp.float32)).astype(o_ref.dtype)


def pallas_linear(x2d, w, b, out_dtype):
    """x2d: (BN, Cin); w: (Cin, Cout) bf16; b: (Cout,) f32 -> (BN, Cout)."""
    x2d, rows = _pad_rows(x2d.astype(w.dtype))
    BN, Cin = x2d.shape
    Cout = w.shape[1]
    tm = _pick_tile(BN, 1024, 128)
    tn = _pick_tile(Cout, 256, 128)
    tk = _pick_tile(Cin, 512, 128)
    obpe = jnp.dtype(out_dtype).itemsize
    est = (2 * tm * tk * 2 + 2 * tk * tn * 2 + 2 * tn * 4
           + 2 * tm * tn * obpe + tm * tn * 4)
    b2 = b.reshape(1, Cout)
    out = pl.pallas_call(
        _proj_kernel,
        out_shape=jax.ShapeDtypeStruct((BN, Cout), out_dtype),
        grid_spec=pltpu.PrefetchScalarGridSpec(
            num_scalar_prefetch=0,
            grid=(BN // tm, Cout // tn, Cin // tk),
            in_specs=[
                pl.BlockSpec((tm, tk), lambda i, j, k: (i, k)),
                pl.BlockSpec((tk, tn), lambda i, j, k: (k, j)),
                pl.BlockSpec((1, tn), lambda i, j, k: (0, j)),
            ],
            out_specs=pl.BlockSpec((tm, tn), lambda i, j, k: (i, j)),
            scratch_shapes=[pltpu.VMEM((tm, tn), jnp.float32)],
        ),
        compiler_params=pltpu.CompilerParams(
            dimension_semantics=("parallel", "parallel", "arbitrary"),
            vmem_limit_bytes=_vmem_limit_bytes(est),
        ),
    )(x2d, w, b2)
    return out[:rows]


# ----------------------------------------------------------------------------
# Kernel 3: flash-style attention (online softmax, probs never materialized).
# q/k/v are (B, N, C) with channel = head*D + d; scale already folded into Wq.
# Also emits per-head LSE (B, H, N, 1) used by the cache-path map kernel.
# ----------------------------------------------------------------------------
def _flash_attn_kernel(q_ref, k_ref, v_ref, o_ref, lse_ref,
                       m_scr, l_scr, acc_scr, *, nh, hd):
    ki = pl.program_id(2)

    @pl.when(ki == 0)
    def _():
        m_scr[...] = jnp.full(m_scr.shape, -jnp.inf, m_scr.dtype)
        l_scr[...] = jnp.zeros(l_scr.shape, l_scr.dtype)
        acc_scr[...] = jnp.zeros(acc_scr.shape, acc_scr.dtype)

    # NOTE: head slices are sub-128-lane windows (masked vld); if a bundle audit
    # shows relayout dominating, move to (B,H,N,D) layout with head on a grid axis.
    for h in range(nh):
        sl = slice(h * hd, (h + 1) * hd)
        qh = q_ref[0, :, sl]                      # (tq, D)  bf16
        kh = k_ref[0, :, sl]                      # (tkv, D)
        vh = v_ref[0, :, sl]                      # (tkv, D)
        s = jax.lax.dot_general(qh, kh, (((1,), (1,)), ((), ())),
                                preferred_element_type=jnp.float32)   # (tq, tkv)
        m_prev = m_scr[h]                         # (tq, 1)
        m_new = jnp.maximum(m_prev, jnp.max(s, axis=-1, keepdims=True))
        alpha = jnp.exp(m_prev - m_new)
        p = jnp.exp(s - m_new)
        l_scr[h] = alpha * l_scr[h] + jnp.sum(p, axis=-1, keepdims=True)
        acc_scr[h] = alpha * acc_scr[h] + jax.lax.dot_general(
            p.astype(vh.dtype), vh, (((1,), (0,)), ((), ())),
            preferred_element_type=jnp.float32)   # (tq, D) f32
        m_scr[h] = m_new

    @pl.when(ki == pl.num_programs(2) - 1)
    def _():
        # Per-head stores (no concatenate): keeps peak live vregs at one head.
        for h in range(nh):
            sl = slice(h * hd, (h + 1) * hd)
            inv_l = pl.reciprocal(l_scr[h], approx=True)
            o_ref[0, :, sl] = (acc_scr[h] * inv_l).astype(o_ref.dtype)
            lse_ref[0, h] = m_scr[h] + jnp.log(l_scr[h])


def pallas_flash_attention(q, k, v, num_heads, head_dim):
    """q, k, v: (B, N, C) channel-flattened -> (out (B,N,C), lse (B,H,N,1) f32)."""
    B, N, C = q.shape
    t_target = 512 if _physical_vmem_bytes() >= 100 * _MiB else 256  # v7x: 64 MiB
    tq = _pick_tile(N, t_target, 8)
    tkv = _pick_tile(N, t_target, 8)
    est = (2 * (tq * C + 2 * tkv * C) * 2
           + 2 * tq * C * q.dtype.itemsize
           + 2 * num_heads * tq * 4
           + num_heads * tq * (2 + head_dim) * 4)
    kern = functools.partial(_flash_attn_kernel, nh=num_heads, hd=head_dim)
    return pl.pallas_call(
        kern,
        out_shape=(
            jax.ShapeDtypeStruct((B, N, C), q.dtype),
            jax.ShapeDtypeStruct((B, num_heads, N, 1), jnp.float32),
        ),
        grid_spec=pltpu.PrefetchScalarGridSpec(
            num_scalar_prefetch=0,
            grid=(B, N // tq, N // tkv),
            in_specs=[
                pl.BlockSpec((1, tq, C), lambda b, qi, ki: (b, qi, 0)),
                pl.BlockSpec((1, tkv, C), lambda b, qi, ki: (b, ki, 0)),
                pl.BlockSpec((1, tkv, C), lambda b, qi, ki: (b, ki, 0)),
            ],
            out_specs=[
                pl.BlockSpec((1, tq, C), lambda b, qi, ki: (b, qi, 0)),
                pl.BlockSpec((1, num_heads, tq, 1), lambda b, qi, ki: (b, 0, qi, 0)),
            ],
            scratch_shapes=[
                pltpu.VMEM((num_heads, tq, 1), jnp.float32),
                pltpu.VMEM((num_heads, tq, 1), jnp.float32),
                pltpu.VMEM((num_heads, tq, head_dim), jnp.float32),
            ],
        ),
        compiler_params=pltpu.CompilerParams(
            dimension_semantics=("parallel", "parallel", "arbitrary"),
            vmem_limit_bytes=_vmem_limit_bytes(est),
        ),
    )(q, k, v)


# ----------------------------------------------------------------------------
# Kernel 4 (cache path): head-mean attention map, fully kv-tiled. Recomputes
# QK^T per (qi, ki) tile and normalizes with the LSE from the flash pass, so no
# full-N K/V residency and no (tq, N) f32 intermediates (v7x-safe).
# Accumulates directly into the VMEM out tile (no register-held acc_map).
# ----------------------------------------------------------------------------
def _attn_map_kernel(q_ref, k_ref, lse_ref, map_ref, *, nh, hd):
    inv_nh = 1.0 / nh
    for h in range(nh):
        sl = slice(h * hd, (h + 1) * hd)
        qh = q_ref[0, :, sl]                      # (tq, D)
        kh = k_ref[0, :, sl]                      # (tkv, D)
        s = jax.lax.dot_general(qh, kh, (((1,), (1,)), ((), ())),
                                preferred_element_type=jnp.float32)   # (tq, tkv)
        p = jnp.exp(s - lse_ref[0, h]) * inv_nh   # normalized softmax probs
        if h == 0:
            map_ref[0] = p.astype(map_ref.dtype)
        else:
            map_ref[0] += p.astype(map_ref.dtype)


def pallas_attn_map(q, k, lse, num_heads, head_dim, map_dtype=jnp.float32):
    """-> attn_map (B, N, N) = softmax(q k^T).mean(over heads)."""
    B, N, C = q.shape
    tq = _pick_tile(N, 256, 8)
    tkv = _pick_tile(N, 512, 128)                 # lane dim of the map tile
    est = 2 * (tq * C * 2 + tkv * C * 2 + num_heads * tq * 4
               + tq * tkv * jnp.dtype(map_dtype).itemsize)
    kern = functools.partial(_attn_map_kernel, nh=num_heads, hd=head_dim)
    return pl.pallas_call(
        kern,
        out_shape=jax.ShapeDtypeStruct((B, N, N), map_dtype),
        grid_spec=pltpu.PrefetchScalarGridSpec(
            num_scalar_prefetch=0,
            grid=(B, N // tq, N // tkv),
            in_specs=[
                pl.BlockSpec((1, tq, C), lambda b, qi, ki: (b, qi, 0)),
                pl.BlockSpec((1, tkv, C), lambda b, qi, ki: (b, ki, 0)),
                pl.BlockSpec((1, num_heads, tq, 1), lambda b, qi, ki: (b, 0, qi, 0)),
            ],
            out_specs=pl.BlockSpec((1, tq, tkv), lambda b, qi, ki: (b, qi, ki)),
        ),
        compiler_params=pltpu.CompilerParams(
            dimension_semantics=("parallel", "parallel", "arbitrary"),
            vmem_limit_bytes=_vmem_limit_bytes(est),
        ),
    )(q, k, lse)


# ----------------------------------------------------------------------------
# Module: Attention (qkv_bias=False, qk_norm=False -> Identity norms, eval mode)
# ----------------------------------------------------------------------------
class AttentionPallas:
    def __init__(self, dim, num_heads=8, compute_dtype=jnp.bfloat16, key=None):
        assert dim % num_heads == 0
        self.dim = dim
        self.num_heads = num_heads
        self.head_dim = dim // num_heads
        self.scale = self.head_dim ** (-0.5)
        self.compute_dtype = compute_dtype
        self.fused_attn = True                     # mirrors timm use_fused_attn()

        if key is None:
            key = jax.random.PRNGKey(42)
        k1, k2, k3 = jax.random.split(key, 3)
        # deterministic synthetic params; torch nn.Linear weight layout is (out, in)
        wqkv = jax.random.normal(k1, (3 * dim, dim), jnp.float32) / jnp.sqrt(dim)
        wproj = jax.random.normal(k2, (dim, dim), jnp.float32) / jnp.sqrt(dim)
        # pre-transpose to (Cin, Cout); fold attention scale into Wq
        self.wq = (wqkv[:dim, :].T * self.scale).astype(compute_dtype)
        self.wk = wqkv[dim:2 * dim, :].T.astype(compute_dtype)
        self.wv = wqkv[2 * dim:, :].T.astype(compute_dtype)
        self.w_proj = wproj.T.astype(compute_dtype)
        self.b_proj = jax.random.normal(k3, (dim,), jnp.float32) * 0.02

    def __call__(self, x, cache_dic=None, current=None, fresh_indices=None):
        B, N, C = x.shape
        H, D = self.num_heads, self.head_dim

        # fused qkv projection; activations cast to bf16 here (not in-kernel)
        x2 = x.reshape(B * N, C).astype(self.compute_dtype)
        q, k, v = pallas_qkv_proj(x2, self.wq, self.wk, self.wv, self.compute_dtype)
        q = q.reshape(B, N, C)
        k = k.reshape(B, N, C)
        v = v.reshape(B, N, C)
        # q_norm / k_norm are Identity (qk_norm=False); dropout p=0 (eval mode)

        if cache_dic is None:
            o, _ = pallas_flash_attention(q, k, v, H, D)           # (B, N, C)
            return pallas_linear(o.reshape(B * N, C), self.w_proj, self.b_proj,
                                 x.dtype).reshape(B, N, C)

        # ---------------- cache path ----------------
        if cache_dic.get('cache_type') == 'kv-norm':
            # torch: cache['cache'][-1][layer]['v_norm'] = torch.norm(v, dim=-1)
            vh = v.reshape(B, N, H, D).astype(jnp.float32)
            v_norm = jnp.sqrt(jnp.sum(vh * vh, axis=-1)).transpose(0, 2, 1)  # (B,H,N)
            try:
                cache_dic['cache'][-1][current['layer']]['v_norm'] = v_norm
            except (KeyError, IndexError, TypeError):
                cache_dic['v_norm'] = v_norm       # best-effort fallback slot

        o, lse = pallas_flash_attention(q, k, v, H, D)             # (B,N,C),(B,H,N,1)
        need_map = (not self.fused_attn) or cache_dic.get('cache_type') == 'attention'
        attn_map = pallas_attn_map(q, k, lse, H, D) if need_map else None

        out = pallas_linear(o.reshape(B * N, C), self.w_proj, self.b_proj,
                            x.dtype).reshape(B, N, C)

        flops = (B * N * C * 3 * C * 2
                 + B * H * N * D
                 + B * H * N * N * D * 2
                 + B * H * N * N * 5
                 + B * H * N * N * D * 2
                 + B * N * C * C * 2)
        cache_dic['flops'] = cache_dic.get('flops', 0) + flops
        return out, attn_map


# ----------------------------------------------------------------------------
def _reference(x, mod):
    """Pure-JAX reference mimicking the kernel's compute dtype (bf16 MXU, f32 acc)."""
    cd = mod.compute_dtype
    B, N, C = x.shape
    H, D = mod.num_heads, mod.head_dim
    xb = x.astype(cd)
    q = jnp.dot(xb, mod.wq, preferred_element_type=jnp.float32).astype(cd)
    k = jnp.dot(xb, mod.wk, preferred_element_type=jnp.float32).astype(cd)
    v = jnp.dot(xb, mod.wv, preferred_element_type=jnp.float32).astype(cd)
    q = q.reshape(B, N, H, D)
    k = k.reshape(B, N, H, D)
    v = v.reshape(B, N, H, D)
    s = jnp.einsum('bqhd,bkhd->bhqk', q, k, preferred_element_type=jnp.float32)
    p = jax.nn.softmax(s, axis=-1)                                  # f32
    o = jnp.einsum('bhqk,bkhd->bqhd', p.astype(cd), v,
                   preferred_element_type=jnp.float32).astype(cd).reshape(B, N, C)
    out = (jnp.dot(o, mod.w_proj, preferred_element_type=jnp.float32)
           + mod.b_proj).astype(x.dtype)
    return out, p.mean(axis=1)


if __name__ == "__main__":
    B, N, C, H = 2, 16, 32, 4          # head_dim = 8
    key = jax.random.PRNGKey(0)
    x = jax.random.normal(key, (B, N, C), jnp.float32)

    mod = AttentionPallas(dim=C, num_heads=H)

    # fast path (cache_dic=None): flash attention, no probs materialized
    y = jax.block_until_ready(mod(x, cache_dic=None))

    # cache path ('attention' cache): returns (out, attn_map) and bumps flops
    cache_dic = {'cache_type': 'attention', 'flops': 0}
    y2, attn_map = mod(x, cache_dic=cache_dic, current={'layer': 0})
    y2 = jax.block_until_ready(y2)
    attn_map = jax.block_until_ready(attn_map)

    # verify against compute-dtype-matched JAX reference
    y_ref, attn_ref = _reference(x, mod)
    assert jnp.allclose(y, y_ref, atol=2e-2, rtol=2e-2)
    assert jnp.allclose(y2, y_ref, atol=2e-2, rtol=2e-2)
    assert jnp.allclose(attn_map, attn_ref, atol=5e-3, rtol=5e-2)
    assert cache_dic['flops'] > 0

    print("KERNEL_OK")
</pallas_src>

<mosaic_0001>
module attributes {stable_mosaic.version = 11 : i64} {
  func.func @_qkv_proj_kernel(%arg0: i32, %arg1: i32, %arg2: i32, %arg3: memref<128x32xbf16, #tpu.memory_space<vmem>>, %arg4: memref<32x32xbf16, #tpu.memory_space<vmem>>, %arg5: memref<32x32xbf16, #tpu.memory_space<vmem>>, %arg6: memref<32x32xbf16, #tpu.memory_space<vmem>>, %arg7: memref<128x32xbf16, #tpu.memory_space<vmem>>, %arg8: memref<128x32xbf16, #tpu.memory_space<vmem>>, %arg9: memref<128x32xbf16, #tpu.memory_space<vmem>>, %arg10: memref<128x32xf32, #tpu.memory_space<vmem>>, %arg11: memref<128x32xf32, #tpu.memory_space<vmem>>, %arg12: memref<128x32xf32, #tpu.memory_space<vmem>>) attributes {dimension_semantics = [#tpu.dimension_semantics<parallel>, #tpu.dimension_semantics<parallel>, #tpu.dimension_semantics<arbitrary>], iteration_bounds = array<i64: 1, 1, 1>, scalar_prefetch = 0 : i64, scratch_operands = 3 : i64, tpu.core_type = #tpu.core_type<tc>, window_params = [{transform_indices = @transform_0, window_bounds = array<i64: 128, 32>}, {transform_indices = @transform_1, window_bounds = array<i64: 32, 32>}, {transform_indices = @transform_2, window_bounds = array<i64: 32, 32>}, {transform_indices = @transform_3, window_bounds = array<i64: 32, 32>}, {transform_indices = @transform_4, window_bounds = array<i64: 128, 32>}, {transform_indices = @transform_5, window_bounds = array<i64: 128, 32>}, {transform_indices = @transform_6, window_bounds = array<i64: 128, 32>}]} {
    %c0_i32 = arith.constant 0 : i32
    %0 = arith.cmpi eq, %arg2, %c0_i32 : i32
    %1 = arith.extui %0 : i1 to i32
    %c0_i32_0 = arith.constant 0 : i32
    %2 = arith.cmpi ne, %1, %c0_i32_0 : i32
    scf.if %2 {
      %cst_24 = arith.constant 0.000000e+00 : f32
      %22 = vector.broadcast %cst_24 : f32 to vector<128x32xf32>
      %c0_25 = arith.constant 0 : index
      %c0_26 = arith.constant 0 : index
      %23 = vector.load %arg10[%c0_25, %c0_26] : memref<128x32xf32, #tpu.memory_space<vmem>>, vector<128x32xf32>
      tpu.vector_store %arg10[%c0_25, %c0_26], %22 {strides = array<i32>} : memref<128x32xf32, #tpu.memory_space<vmem>>, vector<128x32xf32>,
      %cst_27 = arith.constant 0.000000e+00 : f32
      %24 = vector.broadcast %cst_27 : f32 to vector<128x32xf32>
      %c0_28 = arith.constant 0 : index
      %c0_29 = arith.constant 0 : index
      %25 = vector.load %arg11[%c0_28, %c0_29] : memref<128x32xf32, #tpu.memory_space<vmem>>, vector<128x32xf32>
      tpu.vector_store %arg11[%c0_28, %c0_29], %24 {strides = array<i32>} : memref<128x32xf32, #tpu.memory_space<vmem>>, vector<128x32xf32>,
      %cst_30 = arith.constant 0.000000e+00 : f32
      %26 = vector.broadcast %cst_30 : f32 to vector<128x32xf32>
      %c0_31 = arith.constant 0 : index
      %c0_32 = arith.constant 0 : index
      %27 = vector.load %arg12[%c0_31, %c0_32] : memref<128x32xf32, #tpu.memory_space<vmem>>, vector<128x32xf32>
      tpu.vector_store %arg12[%c0_31, %c0_32], %26 {strides = array<i32>} : memref<128x32xf32, #tpu.memory_space<vmem>>, vector<128x32xf32>,
    } else {
    }
    %c0 = arith.constant 0 : index
    %c0_1 = arith.constant 0 : index
    %3 = vector.load %arg3[%c0, %c0_1] : memref<128x32xbf16, #tpu.memory_space<vmem>>, vector<128x32xbf16>
    %c0_2 = arith.constant 0 : index
    %c0_3 = arith.constant 0 : index
    %4 = vector.load %arg10[%c0_2, %c0_3] : memref<128x32xf32, #tpu.memory_space<vmem>>, vector<128x32xf32>
    %c0_4 = arith.constant 0 : index
    %c0_5 = arith.constant 0 : index
    %5 = vector.load %arg4[%c0_4, %c0_5] : memref<32x32xbf16, #tpu.memory_space<vmem>>, vector<32x32xbf16>
    %cst = arith.constant dense<0.000000e+00> : vector<128x32xf32>
    %6 = tpu.matmul %3, %5, %cst {dimension_numbers = #tpu.dot_dimension_numbers<[1], [0], [0], [1], [0, 0, 1, 1], [], []>} : vector<128x32xbf16>, vector<32x32xbf16>, vector<128x32xf32> -> vector<128x32xf32>
    %7 = arith.addf %4, %6 : vector<128x32xf32>
    %c0_6 = arith.constant 0 : index
    %c0_7 = arith.constant 0 : index
    %8 = vector.load %arg10[%c0_6, %c0_7] : memref<128x32xf32, #tpu.memory_space<vmem>>, vector<128x32xf32>
    tpu.vector_store %arg10[%c0_6, %c0_7], %7 {strides = array<i32>} : memref<128x32xf32, #tpu.memory_space<vmem>>, vector<128x32xf32>,
    %c0_8 = arith.constant 0 : index
    %c0_9 = arith.constant 0 : index
    %9 = vector.load %arg11[%c0_8, %c0_9] : memref<128x32xf32, #tpu.memory_space<vmem>>, vector<128x32xf32>
    %c0_10 = arith.constant 0 : index
    %c0_11 = arith.constant 0 : index
    %10 = vector.load %arg5[%c0_10, %c0_11] : memref<32x32xbf16, #tpu.memory_space<vmem>>, vector<32x32xbf16>
    %cst_12 = arith.constant dense<0.000000e+00> : vector<128x32xf32>
    %11 = tpu.matmul %3, %10, %cst_12 {dimension_numbers = #tpu.dot_dimension_numbers<[1], [0], [0], [1], [0, 0, 1, 1], [], []>} : vector<128x32xbf16>, vector<32x32xbf16>, vector<128x32xf32> -> vector<128x32xf32>
    %12 = arith.addf %9, %11 : vector<128x32xf32>
    %c0_13 = arith.constant 0 : index
    %c0_14 = arith.constant 0 : index
    %13 = vector.load %arg11[%c0_13, %c0_14] : memref<128x32xf32, #tpu.memory_space<vmem>>, vector<128x32xf32>
    tpu.vector_store %arg11[%c0_13, %c0_14], %12 {strides = array<i32>} : memref<128x32xf32, #tpu.memory_space<vmem>>, vector<128x32xf32>,
    %c0_15 = arith.constant 0 : index
    %c0_16 = arith.constant 0 : index
    %14 = vector.load %arg12[%c0_15, %c0_16] : memref<128x32xf32, #tpu.memory_space<vmem>>, vector<128x32xf32>
    %c0_17 = arith.constant 0 : index
    %c0_18 = arith.constant 0 : index
    %15 = vector.load %arg6[%c0_17, %c0_18] : memref<32x32xbf16, #tpu.memory_space<vmem>>, vector<32x32xbf16>
    %cst_19 = arith.constant dense<0.000000e+00> : vector<128x32xf32>
    %16 = tpu.matmul %3, %15, %cst_19 {dimension_numbers = #tpu.dot_dimension_numbers<[1], [0], [0], [1], [0, 0, 1, 1], [], []>} : vector<128x32xbf16>, vector<32x32xbf16>, vector<128x32xf32> -> vector<128x32xf32>
    %17 = arith.addf %14, %16 : vector<128x32xf32>
    %c0_20 = arith.constant 0 : index
    %c0_21 = arith.constant 0 : index
    %18 = vector.load %arg12[%c0_20, %c0_21] : memref<128x32xf32, #tpu.memory_space<vmem>>, vector<128x32xf32>
    tpu.vector_store %arg12[%c0_20, %c0_21], %17 {strides = array<i32>} : memref<128x32xf32, #tpu.memory_space<vmem>>, vector<128x32xf32>,
    %c0_i32_22 = arith.constant 0 : i32
    %19 = arith.cmpi eq, %arg2, %c0_i32_22 : i32
    %20 = arith.extui %19 : i1 to i32
    %c0_i32_23 = arith.constant 0 : i32
    %21 = arith.cmpi ne, %20, %c0_i32_23 : i32
    scf.if %21 {
      %c0_24 = arith.constant 0 : index
      %c0_25 = arith.constant 0 : index
      %22 = vector.load %arg10[%c0_24, %c0_25] : memref<128x32xf32, #tpu.memory_space<vmem>>, vector<128x32xf32>
      %23 = arith.truncf %22 : vector<128x32xf32> to vector<128x32xbf16>
      %c0_26 = arith.constant 0 : index
      %c0_27 = arith.constant 0 : index
      %24 = vector.load %arg7[%c0_26, %c0_27] : memref<128x32xbf16, #tpu.memory_space<vmem>>, vector<128x32xbf16>
      tpu.vector_store %arg7[%c0_26, %c0_27], %23 {strides = array<i32>} : memref<128x32xbf16, #tpu.memory_space<vmem>>, vector<128x32xbf16>,
      %c0_28 = arith.constant 0 : index
      %c0_29 = arith.constant 0 : index
      %25 = vector.load %arg11[%c0_28, %c0_29] : memref<128x32xf32, #tpu.memory_space<vmem>>, vector<128x32xf32>
      %26 = arith.truncf %25 : vector<128x32xf32> to vector<128x32xbf16>
      %c0_30 = arith.constant 0 : index
      %c0_31 = arith.constant 0 : index
      %27 = vector.load %arg8[%c0_30, %c0_31] : memref<128x32xbf16, #tpu.memory_space<vmem>>, vector<128x32xbf16>
      tpu.vector_store %arg8[%c0_30, %c0_31], %26 {strides = array<i32>} : memref<128x32xbf16, #tpu.memory_space<vmem>>, vector<128x32xbf16>,
      %c0_32 = arith.constant 0 : index
      %c0_33 = arith.constant 0 : index
      %28 = vector.load %arg12[%c0_32, %c0_33] : memref<128x32xf32, #tpu.memory_space<vmem>>, vector<128x32xf32>
      %29 = arith.truncf %28 : vector<128x32xf32> to vector<128x32xbf16>
      %c0_34 = arith.constant 0 : index
      %c0_35 = arith.constant 0 : index
      %30 = vector.load %arg9[%c0_34, %c0_35] : memref<128x32xbf16, #tpu.memory_space<vmem>>, vector<128x32xbf16>
      tpu.vector_store %arg9[%c0_34, %c0_35], %29 {strides = array<i32>} : memref<128x32xbf16, #tpu.memory_space<vmem>>, vector<128x32xbf16>,
    } else {
    }
    return
  }
  func.func @transform_0(%arg0: i32, %arg1: i32, %arg2: i32) -> (i32, i32) {
    %c0_i32 = arith.constant 0 : i32
    return %arg0, %arg2 : i32, i32
  }
  func.func @transform_1(%arg0: i32, %arg1: i32, %arg2: i32) -> (i32, i32) {
    %c0_i32 = arith.constant 0 : i32
    return %arg2, %arg1 : i32, i32
  }
  func.func @transform_2(%arg0: i32, %arg1: i32, %arg2: i32) -> (i32, i32) {
    %c0_i32 = arith.constant 0 : i32
    return %arg2, %arg1 : i32, i32
  }
  func.func @transform_3(%arg0: i32, %arg1: i32, %arg2: i32) -> (i32, i32) {
    %c0_i32 = arith.constant 0 : i32
    return %arg2, %arg1 : i32, i32
  }
  func.func @transform_4(%arg0: i32, %arg1: i32, %arg2: i32) -> (i32, i32) {
    %c0_i32 = arith.constant 0 : i32
    return %arg0, %arg1 : i32, i32
  }
  func.func @transform_5(%arg0: i32, %arg1: i32, %arg2: i32) -> (i32, i32) {
    %c0_i32 = arith.constant 0 : i32
    return %arg0, %arg1 : i32, i32
  }
  func.func @transform_6(%arg0: i32, %arg1: i32, %arg2: i32) -> (i32, i32) {
    %c0_i32 = arith.constant 0 : i32
    return %arg0, %arg1 : i32, i32
  }
}

</mosaic_0001>

<bundles_post_ra>
// kernel: tpu_custom_call.1
= control target key start
LH: loop header
LB: loop body
LE: loop exit
PB: predicated region body
PF: predicated region fallthrough
CT: control target
= control target key end

     0   :  { %vm25_vm0 = vcmask 261120   ;;  %v755_v12 = vmov 0.0   ;;  %vm529_vm1 = vcmask 257024   ;;  %s1145_s1 = inlined_call_operand.vmem [shape: bf16[32,32], index: 1, kind: input, shape index: {}]   ;;  %s1146_s2 = inlined_call_operand.vmem [shape: bf16[32,32], index: 2, kind: input, shape index: {}]   ;;  %s1147_s3 = inlined_call_operand.vmem [shape: bf16[32,32], index: 3, kind: input, shape index: {}]   ;;  %s1148_s0 = inlined_call_operand.vmem [shape: bf16[128,32], index: 0, kind: input, shape index: {}]   ;;  %s1149_s4 = inlined_call_operand.vmem [shape: bf16[128,32], index: 4, kind: output, shape index: {0}]   ;;  %s1150_s5 = inlined_call_operand.vmem [shape: bf16[128,32], index: 5, kind: output, shape index: {1}]   ;;  %s1151_s6 = inlined_call_operand.vmem [shape: bf16[128,32], index: 6, kind: output, shape index: {2}]  }
   0x1   :  { %v743_v0 = vld [vmem:[%s1145_s1 + $0x8] sm:$0xff]  ;;  %v742_v3 = vld [vmem:[%s1145_s1] sm:$0xff]  ;;  %v740_v7 = vld [vmem:[%s1148_s0 + $0x30] sm:$0xff]  ;;  %26 = vst.msk [vmem:[#allocation2] sm:$0xff] %vm25_vm0, %v755_v12 }
   0x2   :  { %v745_v1 = vld [vmem:[%s1146_s2 + $0x8] sm:$0xff]  ;;  %193 = vmatpush.bf16.msra.mxu0 %v743_v0  ;;  %748 = vmatpush.bf16.msra.mxu3 %v743_v0  ;;  %v744_v4 = vld [vmem:[%s1146_s2] sm:$0xff]  ;;  %v741_v9 = vld [vmem:[%s1148_s0 + $0x38] sm:$0xff]  ;;  %27 = vst.msk [vmem:[#allocation2 + $0x8] sm:$0xff] %vm25_vm0, %v755_v12 }
   0x3   :  { %v747_v2 = vld [vmem:[%s1147_s3 + $0x8] sm:$0xff]  ;;  %306 = vmatpush.bf16.msra.mxu1 %v745_v1  ;;  %v746_v5 = vld [vmem:[%s1147_s3] sm:$0xff]  ;;  %v736_v10 = vld [vmem:[%s1148_s0 + $0x10] sm:$0xff]  ;;  %28 = vst.msk [vmem:[#allocation2 + $0x10] sm:$0xff] %vm25_vm0, %v755_v12 }
   0x4   :  { %419 = vmatpush.bf16.msra.mxu2 %v747_v2  ;;  %v734_v6 = vld [vmem:[%s1148_s0] sm:$0xff]  ;;  %v735_v8 = vld [vmem:[%s1148_s0 + $0x8] sm:$0xff]  ;;  %v737_v11 = vld [vmem:[%s1148_s0 + $0x18] sm:$0xff]  ;;  %29 = vst.msk [vmem:[#allocation2 + $0x18] sm:$0xff] %vm25_vm0, %v755_v12 }
   0x5   :  { %30 = vst.msk [vmem:[#allocation2 + $0x20] sm:$0xff] %vm25_vm0, %v755_v12  ;;  %v738_v13 = vld [vmem:[%s1148_s0 + $0x20] sm:$0xff]  ;;  %v739_v14 = vld [vmem:[%s1148_s0 + $0x28] sm:$0xff] }
   0x6   :  { %194 = vmatpush.bf16.msra.mxu0 %v742_v3  ;;  %749 = vmatpush.bf16.msra.mxu3 %v742_v3  ;;  %31 = vst.msk [vmem:[#allocation2 + $0x28] sm:$0xff] %vm25_vm0, %v755_v12 }
   0x7   :  { %307 = vmatpush.bf16.msra.mxu1 %v744_v4  ;;  %32 = vst.msk [vmem:[#allocation2 + $0x30] sm:$0xff] %vm25_vm0, %v755_v12 }
   0x8   :  { %420 = vmatpush.bf16.msra.mxu2 %v746_v5  ;;  %33 = vst.msk [vmem:[#allocation2 + $0x38] sm:$0xff] %vm25_vm0, %v755_v12  ;;  %v90_v15 = vld [vmem:[#allocation2] sm:$0xff] }
   0x9   :  { %694 = vmatmul.msk.bf16.vlgmr.msra.gmra.mxu0 %vm25_vm0, %v734_v6  ;;  %700 = vmatmul.msk.bf16.vlgmr.msra.gmra.mxu3 %vm25_vm0, %v740_v7  ;;  %34 = vst.msk [vmem:[#allocation2 + $0x40] sm:$0xff] %vm25_vm0, %v755_v12  ;;  %v91_v24 = vld [vmem:[#allocation2 + $0x8] sm:$0xff] }
   0xa   :  { %750 = vmatpush.bf16.msrb.mxu3 %v745_v1  ;;  %710 = vmatmul.msk.bf16.vlgmr.msra.gmra.mxu1 %vm25_vm0, %v734_v6  ;;  %35 = vst.msk [vmem:[#allocation2 + $0x48] sm:$0xff] %vm25_vm0, %v755_v12  ;;  %v92_v44 = vld [vmem:[#allocation2 + $0x10] sm:$0xff] }
   0xb   :  { %726 = vmatmul.msk.bf16.vlgmr.msra.gmra.mxu2 %vm25_vm0, %v734_v6  ;;  %36 = vst.msk [vmem:[#allocation2 + $0x50] sm:$0xff] %vm25_vm0, %v755_v12  ;;  %v93_v60 = vld [vmem:[#allocation2 + $0x18] sm:$0xff] }
   0xc   :  { %37 = vst.msk [vmem:[#allocation2 + $0x58] sm:$0xff] %vm25_vm0, %v755_v12 }
   0xd   :  { %38 = vst.msk [vmem:[#allocation2 + $0x60] sm:$0xff] %vm25_vm0, %v755_v12 }
   0xe   :  { %751 = vmatpush.bf16.msrb.mxu3 %v744_v4  ;;  %39 = vst.msk [vmem:[#allocation2 + $0x68] sm:$0xff] %vm25_vm0, %v755_v12 }
   0xf   :  { %40 = vst.msk [vmem:[#allocation2 + $0x70] sm:$0xff] %vm25_vm0, %v755_v12 }
  0x10   :  { %41 = vst.msk [vmem:[#allocation2 + $0x78] sm:$0xff] %vm25_vm0, %v755_v12 }
  0x11   :  { %42 = vst.msk [vmem:[#allocation3] sm:$0xff] %vm25_vm0, %v755_v12 }
  0x12   :  { %752 = vmatpush.bf16.msra.mxu3 %v747_v2  ;;  %43 = vst.msk [vmem:[#allocation3 + $0x8] sm:$0xff] %vm25_vm0, %v755_v12 }
  0x13   :  { %44 = vst.msk [vmem:[#allocation3 + $0x10] sm:$0xff] %vm25_vm0, %v755_v12 }
  0x14   :  { %45 = vst.msk [vmem:[#allocation3 + $0x18] sm:$0xff] %vm25_vm0, %v755_v12  ;;  %v102_v21 = vld [vmem:[#allocation2 + $0x60] sm:$0xff] }
  0x15   :  { %46 = vst.msk [vmem:[#allocation3 + $0x20] sm:$0xff] %vm25_vm0, %v755_v12  ;;  %v103_v37 = vld [vmem:[#allocation2 + $0x68] sm:$0xff] }
  0x16   :  { %753 = vmatpush.bf16.msra.mxu3 %v746_v5  ;;  %47 = vst.msk [vmem:[#allocation3 + $0x28] sm:$0xff] %vm25_vm0, %v755_v12  ;;  %v104_v57 = vld [vmem:[#allocation2 + $0x70] sm:$0xff] }
  0x17   :  { %48 = vst.msk [vmem:[#allocation3 + $0x30] sm:$0xff] %vm25_vm0, %v755_v12 }
  0x18   :  { %49 = vst.msk [vmem:[#allocation3 + $0x38] sm:$0xff] %vm25_vm0, %v755_v12  ;;  %v268_v16 = vld [vmem:[#allocation3] sm:$0xff] }
  0x19   :  { %695 = vmatmul.msk.bf16.gmra.mxu0 %vm25_vm0, %v735_v8  ;;  %701 = vmatmul.msk.bf16.gmra.mxu3 %vm25_vm0, %v741_v9  ;;  %50 = vst.msk [vmem:[#allocation3 + $0x40] sm:$0xff] %vm25_vm0, %v755_v12  ;;  %v269_v27 = vld [vmem:[#allocation3 + $0x8] sm:$0xff] }
  0x1a   :  { %711 = vmatmul.msk.bf16.gmra.mxu1 %vm25_vm0, %v735_v8  ;;  %51 = vst.msk [vmem:[#allocation3 + $0x48] sm:$0xff] %vm25_vm0, %v755_v12  ;;  %v270_v48 = vld [vmem:[#allocation3 + $0x10] sm:$0xff] }
  0x1b   :  { %727 = vmatmul.msk.bf16.gmra.mxu2 %vm25_vm0, %v735_v8  ;;  %52 = vst.msk [vmem:[#allocation3 + $0x50] sm:$0xff] %vm25_vm0, %v755_v12  ;;  %v271_v63 = vld [vmem:[#allocation3 + $0x18] sm:$0xff] }
  0x1c   :  { %53 = vst.msk [vmem:[#allocation3 + $0x58] sm:$0xff] %vm25_vm0, %v755_v12 }
  0x1d   :  { %54 = vst.msk [vmem:[#allocation3 + $0x60] sm:$0xff] %vm25_vm0, %v755_v12 }
  0x1e   :  { %55 = vst.msk [vmem:[#allocation3 + $0x68] sm:$0xff] %vm25_vm0, %v755_v12 }
  0x1f   :  { %56 = vst.msk [vmem:[#allocation3 + $0x70] sm:$0xff] %vm25_vm0, %v755_v12 }
  0x20   :  { %57 = vst.msk [vmem:[#allocation3 + $0x78] sm:$0xff] %vm25_vm0, %v755_v12 }
  0x21   :  { %58 = vst.msk [vmem:[#allocation4] sm:$0xff] %vm25_vm0, %v755_v12 }
  0x22   :  { %59 = vst.msk [vmem:[#allocation4 + $0x8] sm:$0xff] %vm25_vm0, %v755_v12 }
  0x23   :  { %60 = vst.msk [vmem:[#allocation4 + $0x10] sm:$0xff] %vm25_vm0, %v755_v12 }
  0x24   :  { %61 = vst.msk [vmem:[#allocation4 + $0x18] sm:$0xff] %vm25_vm0, %v755_v12 }
  0x25   :  { %62 = vst.msk [vmem:[#allocation4 + $0x20] sm:$0xff] %vm25_vm0, %v755_v12 }
  0x26   :  { %63 = vst.msk [vmem:[#allocation4 + $0x28] sm:$0xff] %vm25_vm0, %v755_v12 }
  0x27   :  { %64 = vst.msk [vmem:[#allocation4 + $0x30] sm:$0xff] %vm25_vm0, %v755_v12 }
  0x28   :  { %65 = vst.msk [vmem:[#allocation4 + $0x38] sm:$0xff] %vm25_vm0, %v755_v12  ;;  %v381_v22 = vld [vmem:[#allocation4] sm:$0xff] }
  0x29   :  { %696 = vmatmul.msk.bf16.gmra.mxu0 %vm25_vm0, %v736_v10  ;;  %716 = vmatmul.msk.bf16.vlgmr.msrb.gmra.mxu3 %vm25_vm0, %v740_v7  ;;  %66 = vst.msk [vmem:[#allocation4 + $0x40] sm:$0xff] %vm25_vm0, %v755_v12  ;;  %v382_v38 = vld [vmem:[#allocation4 + $0x8] sm:$0xff] }
  0x2a   :  { %712 = vmatmul.msk.bf16.gmra.mxu1 %vm25_vm0, %v736_v10  ;;  %67 = vst.msk [vmem:[#allocation4 + $0x48] sm:$0xff] %vm25_vm0, %v755_v12  ;;  %v383_v58 = vld [vmem:[#allocation4 + $0x10] sm:$0xff] }
  0x2b   :  { %728 = vmatmul.msk.bf16.gmra.mxu2 %vm25_vm0, %v736_v10  ;;  %68 = vst.msk [vmem:[#allocation4 + $0x50] sm:$0xff] %vm25_vm0, %v755_v12  ;;  %v105_v10 = vld [vmem:[#allocation2 + $0x78] sm:$0xff] }
  0x2c   :  { %69 = vst.msk [vmem:[#allocation4 + $0x58] sm:$0xff] %vm25_vm0, %v755_v12 }
  0x2d   :  { %70 = vst.msk [vmem:[#allocation4 + $0x60] sm:$0xff] %vm25_vm0, %v755_v12 }
  0x2e   :  { %71 = vst.msk [vmem:[#allocation4 + $0x68] sm:$0xff] %vm25_vm0, %v755_v12 }
  0x2f   :  { %72 = vst.msk [vmem:[#allocation4 + $0x70] sm:$0xff] %vm25_vm0, %v755_v12 }
  0x30   :  { %73 = vst.msk [vmem:[#allocation4 + $0x78] sm:$0xff] %vm25_vm0, %v755_v12 }
  0x39   :  { %697 = vmatmul.msk.bf16.gmra.mxu0 %vm25_vm0, %v737_v11  ;;  %717 = vmatmul.msk.bf16.gmra.mxu3 %vm25_vm0, %v741_v9 }
  0x3a   :  { %713 = vmatmul.msk.bf16.gmra.mxu1 %vm25_vm0, %v737_v11 }
  0x3b   :  { %729 = vmatmul.msk.bf16.gmra.mxu2 %vm25_vm0, %v737_v11 }
  0x49   :  { %698 = vmatmul.msk.bf16.gmra.mxu0 %vm25_vm0, %v738_v13  ;;  %732 = vmatmul.msk.bf16.vlgmr.msra.gmra.mxu3 %vm25_vm0, %v740_v7 }
  0x4a   :  { %714 = vmatmul.msk.bf16.gmra.mxu1 %vm25_vm0, %v738_v13 }
  0x4b   :  { %730 = vmatmul.msk.bf16.gmra.mxu2 %vm25_vm0, %v738_v13 }
  0x59   :  { %699 = vmatmul.msk.bf16.gmra.mxu0 %vm25_vm0, %v739_v14  ;;  %733 = vmatmul.msk.bf16.gmra.mxu3 %vm25_vm0, %v741_v9 }
  0x5a   :  { %715 = vmatmul.msk.bf16.gmra.mxu1 %vm25_vm0, %v739_v14 }
  0x5b   :  { %731 = vmatmul.msk.bf16.gmra.mxu2 %vm25_vm0, %v739_v14  ;;  %v384_v14 = vld [vmem:[#allocation4 + $0x18] sm:$0xff] }
  0x86   :  { %v196_v17 = vpop.f32.mrf.mxu0 }
  0x87   :  { %v236_v18 = vadd.f32 %v196_v17, %v90_v15  ;;  %v309_v19 = vpop.f32.mrf.mxu1 }
  0x88   :  { %v349_v20 = vadd.f32 %v309_v19, %v268_v16 }
  0x89   :  { %252 = vst.msk [vmem:[#allocation2] sm:$0xff] %vm25_vm0, %v236_v18 }
  0x8a   :  { %365 = vst.msk [vmem:[#allocation3] sm:$0xff] %vm25_vm0, %v349_v20 }
  0x8c   :  { %v226_v23 = vpop.f32.mrf.mxu3 }
  0x8d   :  { %v248_v25 = vadd.f32 %v226_v23, %v102_v21 }
  0x8e   :  { %v422_v26 = vpop.f32.mrf.mxu2  ;;  %v198_v29 = vpop.f32.mrf.mxu0 }
  0x8f   :  { %v462_v28 = vadd.f32 %v422_v26, %v381_v22  ;;  %264 = vst.msk [vmem:[#allocation2 + $0x60] sm:$0xff] %vm25_vm0, %v248_v25  ;;  %v237_v30 = vadd.f32 %v198_v29, %v91_v24  ;;  %v311_v31 = vpop.f32.mrf.mxu1  ;;  %v94_v25 = vld [vmem:[#allocation2 + $0x20] sm:$0xff] }
  0x90   :  { %v497_v32 = vld [vmem:[#allocation2] sm:$0xff]  ;;  %v350_v33 = vadd.f32 %v311_v31, %v269_v27 }
  0x91   :  { %478 = vst.msk [vmem:[#allocation4] sm:$0xff] %vm25_vm0, %v462_v28  ;;  %v513_v34 = vpack.c.bf16 %v497_v32, %v497_v32  ;;  %v546_v35 = vld [vmem:[#allocation3] sm:$0xff] }
  0x92   :  { %253 = vst.msk [vmem:[#allocation2 + $0x8] sm:$0xff] %vm25_vm0, %v237_v30  ;;  %v562_v36 = vpack.c.bf16 %v546_v35, %v546_v35  ;;  %v272_v26 = vld [vmem:[#allocation3 + $0x20] sm:$0xff] }
  0x93   :  { %366 = vst.msk [vmem:[#allocation3 + $0x8] sm:$0xff] %vm25_vm0, %v350_v33  ;;  %v280_v28 = vld [vmem:[#allocation3 + $0x60] sm:$0xff] }
  0x94   :  { %530 = vst.msk [vmem:[%s1149_s4] sm:$0xf] %vm529_vm1, %v513_v34  ;;  %v228_v39 = vpop.f32.mrf.mxu3  ;;  %v385_v32 = vld [vmem:[#allocation4 + $0x20] sm:$0xff] }
  0x95   :  { %578 = vst.msk [vmem:[%s1150_s5] sm:$0xf] %vm529_vm1, %v562_v36  ;;  %v249_v40 = vadd.f32 %v228_v39, %v103_v37  ;;  %v95_v36 = vld [vmem:[#allocation2 + $0x28] sm:$0xff] }
  0x96   :  { %v424_v41 = vpop.f32.mrf.mxu2  ;;  %v509_v42 = vld [vmem:[#allocation2 + $0x60] sm:$0xff]  ;;  %v201_v45 = vpop.f32.mrf.mxu0  ;;  %v273_v39 = vld [vmem:[#allocation3 + $0x28] sm:$0xff] }
  0x97   :  { %v463_v43 = vadd.f32 %v424_v41, %v382_v38  ;;  %v525_v46 = vpack.c.bf16 %v509_v42, %v509_v42  ;;  %265 = vst.msk [vmem:[#allocation2 + $0x68] sm:$0xff] %vm25_vm0, %v249_v40  ;;  %v314_v49 = vpop.f32.mrf.mxu1  ;;  %v238_v54 = vadd.f32 %v201_v45, %v92_v44 }
  0x98   :  { %v594_v47 = vld [vmem:[#allocation4] sm:$0xff]  ;;  %v351_v56 = vadd.f32 %v314_v49, %v270_v48  ;;  %v386_v49 = vld [vmem:[#allocation4 + $0x28] sm:$0xff] }
  0x99   :  { %v610_v50 = vpack.c.bf16 %v594_v47, %v594_v47  ;;  %v498_v51 = vld [vmem:[#allocation2 + $0x8] sm:$0xff]  ;;  %479 = vst.msk [vmem:[#allocation4 + $0x8] sm:$0xff] %vm25_vm0, %v463_v43 }
  0x9a   :  { %542 = vst.msk [vmem:[%s1149_s4 + $0x30] sm:$0xf] %vm529_vm1, %v525_v46  ;;  %v514_v52 = vpack.c.bf16 %v498_v51, %v498_v51  ;;  %v547_v53 = vld [vmem:[#allocation3 + $0x8] sm:$0xff] }
  0x9b   :  { %626 = vst.msk [vmem:[%s1151_s6] sm:$0xf] %vm529_vm1, %v610_v50  ;;  %v563_v55 = vpack.c.bf16 %v547_v53, %v547_v53  ;;  %v281_v46 = vld [vmem:[#allocation3 + $0x68] sm:$0xff] }
  0x9c   :  { %531 = vst.msk [vmem:[%s1149_s4 + $0x4] sm:$0xf] %vm529_vm1, %v514_v52  ;;  %v231_v59 = vpop.f32.mrf.mxu3 }
  0x9d   :  { %579 = vst.msk [vmem:[%s1150_s5 + $0x4] sm:$0xf] %vm529_vm1, %v563_v55  ;;  %v250_v61 = vadd.f32 %v231_v59, %v104_v57 }
  0x9e   :  { %254 = vst.msk [vmem:[#allocation2 + $0x10] sm:$0xff] %vm25_vm0, %v238_v54  ;;  %v427_v62 = vpop.f32.mrf.mxu2  ;;  %v510_v0 = vld [vmem:[#allocation2 + $0x68] sm:$0xff]  ;;  %v203_v2 = vpop.f32.mrf.mxu0 }
  0x9f   :  { %367 = vst.msk [vmem:[#allocation3 + $0x10] sm:$0xff] %vm25_vm0, %v351_v56  ;;  %v464_v1 = vadd.f32 %v427_v62, %v383_v58  ;;  %v526_v3 = vpack.c.bf16 %v510_v0, %v510_v0  ;;  %v239_v5 = vadd.f32 %v203_v2, %v93_v60  ;;  %v316_v6 = vpop.f32.mrf.mxu1  ;;  %v96_v62 = vld [vmem:[#allocation2 + $0x30] sm:$0xff] }
  0xa0   :  { %v595_v4 = vld [vmem:[#allocation4 + $0x8] sm:$0xff]  ;;  %266 = vst.msk [vmem:[#allocation2 + $0x70] sm:$0xff] %vm25_vm0, %v250_v61  ;;  %v352_v8 = vadd.f32 %v316_v6, %v271_v63 }
  0xa1   :  { %v611_v7 = vpack.c.bf16 %v595_v4, %v595_v4  ;;  %480 = vst.msk [vmem:[#allocation4 + $0x10] sm:$0xff] %vm25_vm0, %v464_v1  ;;  %v274_v1 = vld [vmem:[#allocation3 + $0x30] sm:$0xff] }
  0xa2   :  { %543 = vst.msk [vmem:[%s1149_s4 + $0x34] sm:$0xf] %vm529_vm1, %v526_v3 }
  0xa3   :  { %627 = vst.msk [vmem:[%s1151_s6 + $0x4] sm:$0xf] %vm529_vm1, %v611_v7 }
  0xa4   :  { %255 = vst.msk [vmem:[#allocation2 + $0x18] sm:$0xff] %vm25_vm0, %v239_v5  ;;  %v233_v11 = vpop.f32.mrf.mxu3 }
  0xa5   :  { %v499_v9 = vld [vmem:[#allocation2 + $0x10] sm:$0xff]  ;;  %368 = vst.msk [vmem:[#allocation3 + $0x18] sm:$0xff] %vm25_vm0, %v352_v8  ;;  %v251_v21 = vadd.f32 %v233_v11, %v105_v10 }
  0xa6   :  { %v515_v12 = vpack.c.bf16 %v499_v9, %v499_v9  ;;  %v548_v13 = vld [vmem:[#allocation3 + $0x10] sm:$0xff]  ;;  %v429_v15 = vpop.f32.mrf.mxu2  ;;  %v206_v18 = vpop.f32.mrf.mxu0 }
  0xa7   :  { %v564_v16 = vpack.c.bf16 %v548_v13, %v548_v13  ;;  %v511_v17 = vld [vmem:[#allocation2 + $0x70] sm:$0xff]  ;;  %v319_v22 = vpop.f32.mrf.mxu1  ;;  %v465_v24 = vadd.f32 %v429_v15, %v384_v14  ;;  %267 = vst.msk [vmem:[#allocation2 + $0x78] sm:$0xff] %vm25_vm0, %v251_v21  ;;  %v240_v31 = vadd.f32 %v206_v18, %v94_v25  ;;  %v97_v14 = vld [vmem:[#allocation2 + $0x38] sm:$0xff] }
  0xa8   :  { %532 = vst.msk [vmem:[%s1149_s4 + $0x8] sm:$0xf] %vm529_vm1, %v515_v12  ;;  %v527_v19 = vpack.c.bf16 %v511_v17, %v511_v17  ;;  %v596_v20 = vld [vmem:[#allocation4 + $0x10] sm:$0xff]  ;;  %v353_v34 = vadd.f32 %v319_v22, %v272_v26  ;;  %v283_v25 = vld [vmem:[#allocation3 + $0x78] sm:$0xff] }
  0xa9   :  { %580 = vst.msk [vmem:[%s1150_s5 + $0x8] sm:$0xf] %vm529_vm1, %v564_v16  ;;  %v612_v23 = vpack.c.bf16 %v596_v20, %v596_v20  ;;  %v282_v9 = vld [vmem:[#allocation3 + $0x70] sm:$0xff]  ;;  %v388_v26 = vld [vmem:[#allocation4 + $0x38] sm:$0xff] }
  0xaa   :  { %544 = vst.msk [vmem:[%s1149_s4 + $0x38] sm:$0xf] %vm529_vm1, %v527_v19  ;;  %v387_v11 = vld [vmem:[#allocation4 + $0x30] sm:$0xff]  ;;  %v275_v19 = vld [vmem:[#allocation3 + $0x38] sm:$0xff] }
  0xab   :  { %628 = vst.msk [vmem:[%s1151_s6 + $0x8] sm:$0xf] %vm529_vm1, %v612_v23  ;;  %v500_v27 = vld [vmem:[#allocation2 + $0x18] sm:$0xff] }
  0xac   :  { %v516_v29 = vpack.c.bf16 %v500_v27, %v500_v27  ;;  %v549_v30 = vld [vmem:[#allocation3 + $0x18] sm:$0xff]  ;;  %481 = vst.msk [vmem:[#allocation4 + $0x18] sm:$0xff] %vm25_vm0, %v465_v24  ;;  %v339_v35 = vpop.f32.mrf.mxu3 }
  0xad   :  { %v565_v33 = vpack.c.bf16 %v549_v30, %v549_v30  ;;  %v361_v37 = vadd.f32 %v339_v35, %v280_v28  ;;  %256 = vst.msk [vmem:[#allocation2 + $0x20] sm:$0xff] %vm25_vm0, %v240_v31  ;;  %v98_v28 = vld [vmem:[#allocation2 + $0x40] sm:$0xff] }
  0xae   :  { %533 = vst.msk [vmem:[%s1149_s4 + $0xc] sm:$0xf] %vm529_vm1, %v516_v29  ;;  %v432_v38 = vpop.f32.mrf.mxu2  ;;  %v208_v41 = vpop.f32.mrf.mxu0  ;;  %v512_v45 = vld [vmem:[#allocation2 + $0x78] sm:$0xff]  ;;  %v276_v31 = vld [vmem:[#allocation3 + $0x40] sm:$0xff] }
  0xaf   :  { %581 = vst.msk [vmem:[%s1150_s5 + $0xc] sm:$0xf] %vm529_vm1, %v565_v33  ;;  %v466_v40 = vadd.f32 %v432_v38, %v385_v32  ;;  %v241_v42 = vadd.f32 %v208_v41, %v95_v36  ;;  %v321_v43 = vpop.f32.mrf.mxu1  ;;  %v528_v47 = vpack.c.bf16 %v512_v45, %v512_v45 }
  0xb0   :  { %369 = vst.msk [vmem:[#allocation3 + $0x20] sm:$0xff] %vm25_vm0, %v353_v34  ;;  %v354_v44 = vadd.f32 %v321_v43, %v273_v39 }
  0xb1   :  { %377 = vst.msk [vmem:[#allocation3 + $0x60] sm:$0xff] %vm25_vm0, %v361_v37 }
  0xb2   :  { %482 = vst.msk [vmem:[#allocation4 + $0x20] sm:$0xff] %vm25_vm0, %v466_v40 }
  0xb3   :  { %v597_v48 = vld [vmem:[#allocation4 + $0x18] sm:$0xff]  ;;  %257 = vst.msk [vmem:[#allocation2 + $0x28] sm:$0xff] %vm25_vm0, %v241_v42 }
  0xb4   :  { %v613_v50 = vpack.c.bf16 %v597_v48, %v597_v48  ;;  %370 = vst.msk [vmem:[#allocation3 + $0x28] sm:$0xff] %vm25_vm0, %v354_v44  ;;  %v341_v51 = vpop.f32.mrf.mxu3  ;;  %v501_v54 = vld [vmem:[#allocation2 + $0x20] sm:$0xff] }
  0xb5   :  { %545 = vst.msk [vmem:[%s1149_s4 + $0x3c] sm:$0xf] %vm529_vm1, %v528_v47  ;;  %v362_v52 = vadd.f32 %v341_v51, %v281_v46  ;;  %v517_v57 = vpack.c.bf16 %v501_v54, %v501_v54  ;;  %v389_v46 = vld [vmem:[#allocation4 + $0x40] sm:$0xff] }
  0xb6   :  { %v434_v53 = vpop.f32.mrf.mxu2  ;;  %629 = vst.msk [vmem:[%s1151_s6 + $0xc] sm:$0xf] %vm529_vm1, %v613_v50  ;;  %v211_v56 = vpop.f32.mrf.mxu0  ;;  %v393_v51 = vld [vmem:[#allocation4 + $0x60] sm:$0xff] }
  0xb7   :  { %v467_v55 = vadd.f32 %v434_v53, %v386_v49  ;;  %v550_v58 = vld [vmem:[#allocation3 + $0x20] sm:$0xff]  ;;  %378 = vst.msk [vmem:[#allocation3 + $0x68] sm:$0xff] %vm25_vm0, %v362_v52  ;;  %v324_v59 = vpop.f32.mrf.mxu1  ;;  %v242_v6 = vadd.f32 %v211_v56, %v96_v62  ;;  %v277_v62 = vld [vmem:[#allocation3 + $0x48] sm:$0xff] }
  0xb8   :  { %v566_v60 = vpack.c.bf16 %v550_v58, %v550_v58  ;;  %v558_v61 = vld [vmem:[#allocation3 + $0x60] sm:$0xff]  ;;  %534 = vst.msk [vmem:[%s1149_s4 + $0x10] sm:$0xf] %vm529_vm1, %v517_v57  ;;  %v355_v8 = vadd.f32 %v324_v59, %v274_v1 }
  0xb9   :  { %483 = vst.msk [vmem:[#allocation4 + $0x28] sm:$0xff] %vm25_vm0, %v467_v55  ;;  %v574_v63 = vpack.c.bf16 %v558_v61, %v558_v61  ;;  %v598_v0 = vld [vmem:[#allocation4 + $0x20] sm:$0xff]  ;;  %v99_v61 = vld [vmem:[#allocation2 + $0x48] sm:$0xff] }
  0xba   :  { %582 = vst.msk [vmem:[%s1150_s5 + $0x10] sm:$0xf] %vm529_vm1, %v566_v60  ;;  %v614_v2 = vpack.c.bf16 %v598_v0, %v598_v0  ;;  %v502_v3 = vld [vmem:[#allocation2 + $0x28] sm:$0xff] }
  0xbb   :  { %590 = vst.msk [vmem:[%s1150_s5 + $0x30] sm:$0xf] %vm529_vm1, %v574_v63  ;;  %v518_v4 = vpack.c.bf16 %v502_v3, %v502_v3  ;;  %v551_v5 = vld [vmem:[#allocation3 + $0x28] sm:$0xff] }
  0xbc   :  { %630 = vst.msk [vmem:[%s1151_s6 + $0x10] sm:$0xf] %vm529_vm1, %v614_v2  ;;  %v567_v7 = vpack.c.bf16 %v551_v5, %v551_v5  ;;  %v344_v10 = vpop.f32.mrf.mxu3  ;;  %v390_v3 = vld [vmem:[#allocation4 + $0x48] sm:$0xff] }
  0xbd   :  { %535 = vst.msk [vmem:[%s1149_s4 + $0x14] sm:$0xf] %vm529_vm1, %v518_v4  ;;  %v363_v18 = vadd.f32 %v344_v10, %v282_v9  ;;  %v394_v4 = vld [vmem:[#allocation4 + $0x68] sm:$0xff]  ;;  %v278_v10 = vld [vmem:[#allocation3 + $0x50] sm:$0xff] }
  0xbe   :  { %v437_v12 = vpop.f32.mrf.mxu2  ;;  %583 = vst.msk [vmem:[%s1150_s5 + $0x14] sm:$0xf] %vm529_vm1, %v567_v7  ;;  %v559_v13 = vld [vmem:[#allocation3 + $0x68] sm:$0xff]  ;;  %v213_v15 = vpop.f32.mrf.mxu0 }
  0xbf   :  { %v575_v16 = vpack.c.bf16 %v559_v13, %v559_v13  ;;  %258 = vst.msk [vmem:[#allocation2 + $0x30] sm:$0xff] %vm25_vm0, %v242_v6  ;;  %v326_v20 = vpop.f32.mrf.mxu1  ;;  %v468_v22 = vadd.f32 %v437_v12, %v387_v11  ;;  %v243_v23 = vadd.f32 %v213_v15, %v97_v14 }
  0xc0   :  { %v599_v17 = vld [vmem:[#allocation4 + $0x28] sm:$0xff]  ;;  %371 = vst.msk [vmem:[#allocation3 + $0x30] sm:$0xff] %vm25_vm0, %v355_v8  ;;  %v356_v24 = vadd.f32 %v326_v20, %v275_v19  ;;  %v100_v8 = vld [vmem:[#allocation2 + $0x50] sm:$0xff] }
  0xc1   :  { %v615_v21 = vpack.c.bf16 %v599_v17, %v599_v17  ;;  %591 = vst.msk [vmem:[%s1150_s5 + $0x34] sm:$0xf] %vm529_vm1, %v575_v16 }
  0xc2   :  { %379 = vst.msk [vmem:[#allocation3 + $0x70] sm:$0xff] %vm25_vm0, %v363_v18  ;;  %v395_v18 = vld [vmem:[#allocation4 + $0x70] sm:$0xff] }
  0xc3   :  { %631 = vst.msk [vmem:[%s1151_s6 + $0x14] sm:$0xf] %vm529_vm1, %v615_v21  ;;  %v391_v21 = vld [vmem:[#allocation4 + $0x50] sm:$0xff] }
  0xc4   :  { %484 = vst.msk [vmem:[#allocation4 + $0x30] sm:$0xff] %vm25_vm0, %v468_v22  ;;  %v346_v27 = vpop.f32.mrf.mxu3 }
  0xc5   :  { %259 = vst.msk [vmem:[#allocation2 + $0x38] sm:$0xff] %vm25_vm0, %v243_v23  ;;  %v364_v29 = vadd.f32 %v346_v27, %v283_v25 }
  0xc6   :  { %v439_v30 = vpop.f32.mrf.mxu2  ;;  %v503_v32 = vld [vmem:[#allocation2 + $0x30] sm:$0xff]  ;;  %372 = vst.msk [vmem:[#allocation3 + $0x38] sm:$0xff] %vm25_vm0, %v356_v24  ;;  %v216_v34 = vpop.f32.mrf.mxu0 }
  0xc7   :  { %v469_v33 = vadd.f32 %v439_v30, %v388_v26  ;;  %v519_v35 = vpack.c.bf16 %v503_v32, %v503_v32  ;;  %v552_v36 = vld [vmem:[#allocation3 + $0x30] sm:$0xff]  ;;  %380 = vst.msk [vmem:[#allocation3 + $0x78] sm:$0xff] %vm25_vm0, %v364_v29  ;;  %v244_v37 = vadd.f32 %v216_v34, %v98_v28  ;;  %v329_v38 = vpop.f32.mrf.mxu1  ;;  %v101_v32 = vld [vmem:[#allocation2 + $0x58] sm:$0xff] }
  0xc8   :  { %v568_v39 = vpack.c.bf16 %v552_v36, %v552_v36  ;;  %v357_v40 = vadd.f32 %v329_v38, %v276_v31  ;;  %v279_v36 = vld [vmem:[#allocation3 + $0x58] sm:$0xff] }
  0xc9   :  { %485 = vst.msk [vmem:[#allocation4 + $0x38] sm:$0xff] %vm25_vm0, %v469_v33  ;;  %v560_v41 = vld [vmem:[#allocation3 + $0x70] sm:$0xff] }
  0xca   :  { %536 = vst.msk [vmem:[%s1149_s4 + $0x18] sm:$0xf] %vm529_vm1, %v519_v35  ;;  %v576_v42 = vpack.c.bf16 %v560_v41, %v560_v41 }
  0xcb   :  { %584 = vst.msk [vmem:[%s1150_s5 + $0x18] sm:$0xf] %vm529_vm1, %v568_v39  ;;  %v600_v43 = vld [vmem:[#allocation4 + $0x30] sm:$0xff] }
  0xcc   :  { %260 = vst.msk [vmem:[#allocation2 + $0x40] sm:$0xff] %vm25_vm0, %v244_v37  ;;  %v616_v44 = vpack.c.bf16 %v600_v43, %v600_v43  ;;  %v504_v45 = vld [vmem:[#allocation2 + $0x38] sm:$0xff]  ;;  %v452_v47 = vpop.f32.mrf.mxu3 }
  0xcd   :  { %373 = vst.msk [vmem:[#allocation3 + $0x40] sm:$0xff] %vm25_vm0, %v357_v40  ;;  %v520_v48 = vpack.c.bf16 %v504_v45, %v504_v45  ;;  %v553_v49 = vld [vmem:[#allocation3 + $0x38] sm:$0xff]  ;;  %v474_v60 = vadd.f32 %v452_v47, %v393_v51 }
  0xce   :  { %592 = vst.msk [vmem:[%s1150_s5 + $0x38] sm:$0xf] %vm529_vm1, %v576_v42  ;;  %v442_v50 = vpop.f32.mrf.mxu2  ;;  %v569_v52 = vpack.c.bf16 %v553_v49, %v553_v49  ;;  %v561_v53 = vld [vmem:[#allocation3 + $0x78] sm:$0xff]  ;;  %v218_v54 = vpop.f32.mrf.mxu0 }
  0xcf   :  { %632 = vst.msk [vmem:[%s1151_s6 + $0x18] sm:$0xf] %vm529_vm1, %v616_v44  ;;  %v577_v55 = vpack.c.bf16 %v561_v53, %v561_v53  ;;  %v470_v57 = vadd.f32 %v442_v50, %v389_v46  ;;  %v331_v58 = vpop.f32.mrf.mxu1  ;;  %v245_v2 = vadd.f32 %v218_v54, %v99_v61  ;;  %v392_v45 = vld [vmem:[#allocation4 + $0x58] sm:$0xff] }
  0xd0   :  { %537 = vst.msk [vmem:[%s1149_s4 + $0x1c] sm:$0xf] %vm529_vm1, %v520_v48  ;;  %v601_v56 = vld [vmem:[#allocation4 + $0x38] sm:$0xff]  ;;  %v358_v6 = vadd.f32 %v331_v58, %v277_v62 }
  0xd1   :  { %585 = vst.msk [vmem:[%s1150_s5 + $0x1c] sm:$0xf] %vm529_vm1, %v569_v52  ;;  %v617_v59 = vpack.c.bf16 %v601_v56, %v601_v56  ;;  %v396_v47 = vld [vmem:[#allocation4 + $0x78] sm:$0xff] }
  0xd2   :  { %593 = vst.msk [vmem:[%s1150_s5 + $0x3c] sm:$0xf] %vm529_vm1, %v577_v55 }
  0xd3   :  { %633 = vst.msk [vmem:[%s1151_s6 + $0x1c] sm:$0xf] %vm529_vm1, %v617_v59  ;;  %v505_v63 = vld [vmem:[#allocation2 + $0x40] sm:$0xff] }
  0xd4   :  { %v521_v0 = vpack.c.bf16 %v505_v63, %v505_v63  ;;  %v554_v1 = vld [vmem:[#allocation3 + $0x40] sm:$0xff]  ;;  %486 = vst.msk [vmem:[#allocation4 + $0x40] sm:$0xff] %vm25_vm0, %v470_v57  ;;  %v454_v7 = vpop.f32.mrf.mxu3 }
  0xd5   :  { %v570_v5 = vpack.c.bf16 %v554_v1, %v554_v1  ;;  %490 = vst.msk [vmem:[#allocation4 + $0x60] sm:$0xff] %vm25_vm0, %v474_v60  ;;  %v475_v12 = vadd.f32 %v454_v7, %v394_v4 }
  0xd6   :  { %538 = vst.msk [vmem:[%s1149_s4 + $0x20] sm:$0xf] %vm529_vm1, %v521_v0  ;;  %v444_v9 = vpop.f32.mrf.mxu2  ;;  %v221_v13 = vpop.f32.mrf.mxu0 }
  0xd7   :  { %586 = vst.msk [vmem:[%s1150_s5 + $0x20] sm:$0xf] %vm529_vm1, %v570_v5  ;;  %v471_v11 = vadd.f32 %v444_v9, %v390_v3  ;;  %v246_v14 = vadd.f32 %v221_v13, %v100_v8  ;;  %v334_v15 = vpop.f32.mrf.mxu1 }
  0xd8   :  { %261 = vst.msk [vmem:[#allocation2 + $0x48] sm:$0xff] %vm25_vm0, %v245_v2  ;;  %v359_v16 = vadd.f32 %v334_v15, %v278_v10 }
  0xd9   :  { %374 = vst.msk [vmem:[#allocation3 + $0x48] sm:$0xff] %vm25_vm0, %v358_v6 }
  0xda   :  { %487 = vst.msk [vmem:[#allocation4 + $0x48] sm:$0xff] %vm25_vm0, %v471_v11 }
  0xdb   :  { %v602_v17 = vld [vmem:[#allocation4 + $0x40] sm:$0xff]  ;;  %491 = vst.msk [vmem:[#allocation4 + $0x68] sm:$0xff] %vm25_vm0, %v475_v12 }
  0xdc   :  { %v618_v19 = vpack.c.bf16 %v602_v17, %v602_v17  ;;  %v606_v20 = vld [vmem:[#allocation4 + $0x60] sm:$0xff]  ;;  %262 = vst.msk [vmem:[#allocation2 + $0x50] sm:$0xff] %vm25_vm0, %v246_v14  ;;  %v457_v23 = vpop.f32.mrf.mxu3 }
  0xdd   :  { %v622_v22 = vpack.c.bf16 %v606_v20, %v606_v20  ;;  %375 = vst.msk [vmem:[#allocation3 + $0x50] sm:$0xff] %vm25_vm0, %v359_v16  ;;  %v476_v25 = vadd.f32 %v457_v23, %v395_v18 }
  0xde   :  { %634 = vst.msk [vmem:[%s1151_s6 + $0x20] sm:$0xf] %vm529_vm1, %v618_v19  ;;  %v447_v24 = vpop.f32.mrf.mxu2  ;;  %v223_v33 = vpop.f32.mrf.mxu0 }
  0xdf   :  { %638 = vst.msk [vmem:[%s1151_s6 + $0x30] sm:$0xf] %vm529_vm1, %v622_v22  ;;  %v506_v26 = vld [vmem:[#allocation2 + $0x48] sm:$0xff]  ;;  %v472_v27 = vadd.f32 %v447_v24, %v391_v21  ;;  %v336_v37 = vpop.f32.mrf.mxu1  ;;  %v247_v42 = vadd.f32 %v223_v33, %v101_v32 }
  0xe0   :  { %v522_v28 = vpack.c.bf16 %v506_v26, %v506_v26  ;;  %v555_v29 = vld [vmem:[#allocation3 + $0x48] sm:$0xff]  ;;  %492 = vst.msk [vmem:[#allocation4 + $0x70] sm:$0xff] %vm25_vm0, %v476_v25  ;;  %v360_v44 = vadd.f32 %v336_v37, %v279_v36 }
  0xe1   :  { %v571_v30 = vpack.c.bf16 %v555_v29, %v555_v29  ;;  %v603_v31 = vld [vmem:[#allocation4 + $0x48] sm:$0xff]  ;;  %488 = vst.msk [vmem:[#allocation4 + $0x50] sm:$0xff] %vm25_vm0, %v472_v27 }
  0xe2   :  { %539 = vst.msk [vmem:[%s1149_s4 + $0x24] sm:$0xf] %vm529_vm1, %v522_v28  ;;  %v619_v34 = vpack.c.bf16 %v603_v31, %v603_v31  ;;  %v607_v35 = vld [vmem:[#allocation4 + $0x68] sm:$0xff] }
  0xe3   :  { %587 = vst.msk [vmem:[%s1150_s5 + $0x24] sm:$0xf] %vm529_vm1, %v571_v30  ;;  %v623_v38 = vpack.c.bf16 %v607_v35, %v607_v35  ;;  %v507_v39 = vld [vmem:[#allocation2 + $0x50] sm:$0xff] }
  0xe4   :  { %635 = vst.msk [vmem:[%s1151_s6 + $0x24] sm:$0xf] %vm529_vm1, %v619_v34  ;;  %v523_v40 = vpack.c.bf16 %v507_v39, %v507_v39  ;;  %v556_v41 = vld [vmem:[#allocation3 + $0x50] sm:$0xff]  ;;  %v459_v48 = vpop.f32.mrf.mxu3 }
  0xe5   :  { %639 = vst.msk [vmem:[%s1151_s6 + $0x34] sm:$0xf] %vm529_vm1, %v623_v38  ;;  %v572_v43 = vpack.c.bf16 %v556_v41, %v556_v41  ;;  %v477_v54 = vadd.f32 %v459_v48, %v396_v47 }
  0xe6   :  { %540 = vst.msk [vmem:[%s1149_s4 + $0x28] sm:$0xf] %vm529_vm1, %v523_v40  ;;  %v449_v46 = vpop.f32.mrf.mxu2 }
  0xe7   :  { %588 = vst.msk [vmem:[%s1150_s5 + $0x28] sm:$0xf] %vm529_vm1, %v572_v43  ;;  %v608_v49 = vld [vmem:[#allocation4 + $0x70] sm:$0xff]  ;;  %v473_v52 = vadd.f32 %v449_v46, %v392_v45 }
  0xe8   :  { %v604_v50 = vld [vmem:[#allocation4 + $0x50] sm:$0xff]  ;;  %v624_v51 = vpack.c.bf16 %v608_v49, %v608_v49  ;;  %263 = vst.msk [vmem:[#allocation2 + $0x58] sm:$0xff] %vm25_vm0, %v247_v42 }
  0xe9   :  { %v620_v53 = vpack.c.bf16 %v604_v50, %v604_v50  ;;  %376 = vst.msk [vmem:[#allocation3 + $0x58] sm:$0xff] %vm25_vm0, %v360_v44 }
  0xea   :  { %640 = vst.msk [vmem:[%s1151_s6 + $0x38] sm:$0xf] %vm529_vm1, %v624_v51 }
  0xeb   :  { %636 = vst.msk [vmem:[%s1151_s6 + $0x28] sm:$0xf] %vm529_vm1, %v620_v53 }
  0xec   :  { %489 = vst.msk [vmem:[#allocation4 + $0x58] sm:$0xff] %vm25_vm0, %v473_v52 }
  0xed   :  { %493 = vst.msk [vmem:[#allocation4 + $0x78] sm:$0xff] %vm25_vm0, %v477_v54 }
  0xef   :  { %v508_v55 = vld [vmem:[#allocation2 + $0x58] sm:$0xff] }
  0xf0   :  { %v524_v56 = vpack.c.bf16 %v508_v55, %v508_v55  ;;  %v557_v57 = vld [vmem:[#allocation3 + $0x58] sm:$0xff] }
  0xf1   :  { %v573_v58 = vpack.c.bf16 %v557_v57, %v557_v57 }
  0xf2   :  { %541 = vst.msk [vmem:[%s1149_s4 + $0x2c] sm:$0xf] %vm529_vm1, %v524_v56 }
  0xf3   :  { %589 = vst.msk [vmem:[%s1150_s5 + $0x2c] sm:$0xf] %vm529_vm1, %v573_v58  ;;  %v605_v59 = vld [vmem:[#allocation4 + $0x58] sm:$0xff] }
  0xf4   :  { %v621_v60 = vpack.c.bf16 %v605_v59, %v605_v59  ;;  %v609_v61 = vld [vmem:[#allocation4 + $0x78] sm:$0xff] }
  0xf5   :  { %v625_v62 = vpack.c.bf16 %v609_v61, %v609_v61 }
  0xf6   :  { %637 = vst.msk [vmem:[%s1151_s6 + $0x2c] sm:$0xf] %vm529_vm1, %v621_v60 }
  0xf7   :  { %641 = vst.msk [vmem:[%s1151_s6 + $0x3c] sm:$0xf] %vm529_vm1, %v625_v62 }

</bundles_post_ra>
